<compile_context>
chip_gen: v5e
topology: v5e:2x2
jax: 0.10.0
libtpu: 0.0.40
codegen_flags: <defaults>
</compile_context>

<pallas_src>
import functools

import jax
import jax.numpy as jnp
from jax import lax
from jax.experimental import pallas as pl
from jax.experimental.pallas import tpu as pltpu

BN_EPS = 1e-5
LANE = 128


def _round_up(n: int, m: int) -> int:
    return ((n + m - 1) // m) * m


def _mlp_kernel(x_ref, wa_ref, ba_ref, wc_ref, bc_ref, o_ref):
    # tanh -> affine A (folded BN0 + Linear1) -> ReLU -> affine C (folded
    # Linear2 + BN2 + Linear3 + BN3 + Linear4)
    h = jnp.tanh(x_ref[...])
    h = jnp.dot(h, wa_ref[...], preferred_element_type=jnp.float32) + ba_ref[...]
    h = jnp.maximum(h, 0.0)
    y = jnp.dot(h, wc_ref[...], preferred_element_type=jnp.float32) + bc_ref[...]
    o_ref[...] = y.astype(o_ref.dtype)


@functools.partial(jax.jit, static_argnames=("tile_b",))
def mlp_forward(x, params, *, tile_b=2048):
    """params: flat tuple of 20 arrays (original, un-folded module params)."""
    (g0, b0, m0, v0, w1, bb1, w2, bb2, g2, b2, m2, v2,
     w3, bb3, g3, b3, m3, v3, w4, bb4) = params

    # ---- Fold BN0 -> Linear1 into (Wa, ba) -------------------------------
    s0 = g0 * lax.rsqrt(v0 + BN_EPS)              # (1, F0) per-feature scale
    wa = s0.reshape(-1, 1) * w1                   # (F0, F1)
    ba = (b0 - m0 * s0) @ w1 + bb1                # (1, F1)

    # ---- Fold Linear2 -> BN2 -> Linear3 -> BN3 -> Linear4 into (Wc, bc) --
    s2 = g2 * lax.rsqrt(v2 + BN_EPS)              # (1, F2)
    s3 = g3 * lax.rsqrt(v3 + BN_EPS)              # (1, F3)
    w2d = w2 * s2                                 # (F1, F2)
    b2d = bb2 * s2 + (b2 - m2 * s2)               # (1, F2)
    w23 = w2d @ w3                                # (F1, F3)
    b23 = b2d @ w3 + bb3                          # (1, F3)
    w23d = w23 * s3
    b23d = b23 * s3 + (b3 - m3 * s3)
    wc = w23d @ w4                                # (F1, F4)
    bc = b23d @ w4 + bb4                          # (1, F4)

    B, F0 = x.shape
    F1 = wa.shape[1]
    F4 = wc.shape[1]

    # Lane-dense output: pad the final width up to a multiple of 128 lanes so
    # the store path is unmasked vst (biggest single lever per perf notes).
    F4p = _round_up(F4, LANE)
    wc_p = jnp.zeros((F1, F4p), jnp.float32).at[:, :F4].set(wc)
    bc_p = jnp.zeros((1, F4p), jnp.float32).at[:, :F4].set(bc)

    # Batch tiling: multiple of 8 sublanes, capped for VMEM headroom
    # (tile 2048 -> ~1 MiB output tile, double-buffered, well inside VMEM).
    tb = min(int(tile_b), _round_up(B, 8))
    tb = _round_up(tb, 8)
    Bp = _round_up(B, tb)
    if Bp != B:
        x = jnp.pad(x, ((0, Bp - B), (0, 0)))

    out = pl.pallas_call(
        _mlp_kernel,
        out_shape=jax.ShapeDtypeStruct((Bp, F4p), jnp.float32),
        grid_spec=pltpu.PrefetchScalarGridSpec(
            num_scalar_prefetch=0,
            grid=(Bp // tb,),
            in_specs=[
                pl.BlockSpec((tb, F0), lambda i: (i, 0)),      # x: batch-tiled
                pl.BlockSpec((F0, F1), lambda i: (0, 0)),      # Wa: resident
                pl.BlockSpec((1, F1), lambda i: (0, 0)),       # ba: resident
                pl.BlockSpec((F1, F4p), lambda i: (0, 0)),     # Wc: resident
                pl.BlockSpec((1, F4p), lambda i: (0, 0)),      # bc: resident
            ],
            out_specs=pl.BlockSpec((tb, F4p), lambda i: (i, 0)),
        ),
        compiler_params=pltpu.CompilerParams(
            dimension_semantics=("parallel",)),
    )(x, wa, ba, wc_p, bc_p)

    return out[:B, :F4]


def init_params(key, dims):
    """Deterministic synthetic parameters. dims = (F0, F1, F2, F3, F4)."""
    F0, F1, F2, F3, F4 = dims
    keys = iter(jax.random.split(key, 32))

    def bn(f):
        # gamma ~ U(0.5, 1.5), beta = 0 (reset_parameters),
        # running_mean ~ N(0, 0.1), running_var ~ U(0.5, 1.5)
        g = jax.random.uniform(next(keys), (1, f), jnp.float32, 0.5, 1.5)
        b = jnp.zeros((1, f), jnp.float32)
        m = 0.1 * jax.random.normal(next(keys), (1, f), jnp.float32)
        v = jax.random.uniform(next(keys), (1, f), jnp.float32, 0.5, 1.5)
        return g, b, m, v

    def linear(fin, fout):
        # xavier_normal_ on PyTorch weight (fout, fin); stored here as (fin, fout)
        std = (2.0 / (fin + fout)) ** 0.5
        w = std * jax.random.normal(next(keys), (fin, fout), jnp.float32)
        b = jnp.zeros((1, fout), jnp.float32)  # nn.init.constant_(bias, 0.0)
        return w, b

    g0, b0, m0, v0 = bn(F0)
    w1, bb1 = linear(F0, F1)
    w2, bb2 = linear(F1, F2)
    g2, b2, m2, v2 = bn(F2)
    w3, bb3 = linear(F2, F3)
    g3, b3, m3, v3 = bn(F3)
    w4, bb4 = linear(F3, F4)
    return (g0, b0, m0, v0, w1, bb1, w2, bb2, g2, b2, m2, v2,
            w3, bb3, g3, b3, m3, v3, w4, bb4)


def reference_forward(x, params):
    """Un-folded reference replicating the PyTorch forward (eval mode)."""
    (g0, b0, m0, v0, w1, bb1, w2, bb2, g2, b2, m2, v2,
     w3, bb3, g3, b3, m3, v3, w4, bb4) = params
    x = jnp.tanh(x)
    x = (x - m0) / jnp.sqrt(v0 + BN_EPS) * g0 + b0
    x = jnp.maximum(x @ w1 + bb1, 0.0)
    x = x @ w2 + bb2
    x = (x - m2) / jnp.sqrt(v2 + BN_EPS) * g2 + b2
    x = x @ w3 + bb3
    x = (x - m3) / jnp.sqrt(v3 + BN_EPS) * g3 + b3
    return x @ w4 + bb4


if __name__ == "__main__":
    # layers = [16, 32, 64, 32, 16, ...]; forward only uses [0..4].
    dims = (16, 32, 64, 32, 16)
    B = 200  # deliberately not a tile multiple: exercises batch padding + grid

    key = jax.random.PRNGKey(0)
    k_x, k_p = jax.random.split(key)
    x = jax.random.normal(k_x, (B, dims[0]), jnp.float32)
    params = init_params(k_p, dims)

    # small tile here to exercise a multi-step (multi-tile) grid; default 2048
    out = mlp_forward(x, params, tile_b=64)
    out = jax.block_until_ready(out)

    ref = reference_forward(x, params)
    assert out.shape == (B, dims[4])
    assert jnp.allclose(out, ref, atol=1e-4, rtol=1e-4), "mismatch vs JAX reference"

    print("KERNEL_OK")
</pallas_src>

<mosaic_0001>
module attributes {stable_mosaic.version = 11 : i64} {
  func.func @_mlp_kernel(%arg0: i32, %arg1: memref<64x16xf32, #tpu.memory_space<vmem>>, %arg2: memref<16x32xf32, #tpu.memory_space<vmem>>, %arg3: memref<1x32xf32, #tpu.memory_space<vmem>>, %arg4: memref<32x128xf32, #tpu.memory_space<vmem>>, %arg5: memref<1x128xf32, #tpu.memory_space<vmem>>, %arg6: memref<64x128xf32, #tpu.memory_space<vmem>>) attributes {dimension_semantics = [#tpu.dimension_semantics<parallel>], iteration_bounds = array<i64: 4>, scalar_prefetch = 0 : i64, scratch_operands = 0 : i64, tpu.core_type = #tpu.core_type<tc>, window_params = [{transform_indices = @transform_0, window_bounds = array<i64: 64, 16>}, {pipeline_mode = #tpu.pipeline_mode<synchronous>, transform_indices = @transform_1, window_bounds = array<i64: 16, 32>}, {pipeline_mode = #tpu.pipeline_mode<synchronous>, transform_indices = @transform_2, window_bounds = array<i64: 1, 32>}, {pipeline_mode = #tpu.pipeline_mode<synchronous>, transform_indices = @transform_3, window_bounds = array<i64: 32, 128>}, {pipeline_mode = #tpu.pipeline_mode<synchronous>, transform_indices = @transform_4, window_bounds = array<i64: 1, 128>}, {transform_indices = @transform_5, window_bounds = array<i64: 64, 128>}]} {
    %c0 = arith.constant 0 : index
    %c0_0 = arith.constant 0 : index
    %0 = vector.load %arg1[%c0, %c0_0] : memref<64x16xf32, #tpu.memory_space<vmem>>, vector<64x16xf32>
    %1 = math.tanh %0 : vector<64x16xf32>
    %c0_1 = arith.constant 0 : index
    %c0_2 = arith.constant 0 : index
    %2 = vector.load %arg2[%c0_1, %c0_2] : memref<16x32xf32, #tpu.memory_space<vmem>>, vector<16x32xf32>
    %cst = arith.constant dense<0.000000e+00> : vector<64x32xf32>
    %3 = tpu.matmul %1, %2, %cst {dimension_numbers = #tpu.dot_dimension_numbers<[1], [0], [0], [1], [0, 0, 1, 1], [], []>} : vector<64x16xf32>, vector<16x32xf32>, vector<64x32xf32> -> vector<64x32xf32>
    %c0_3 = arith.constant 0 : index
    %c0_4 = arith.constant 0 : index
    %4 = vector.load %arg3[%c0_3, %c0_4] : memref<1x32xf32, #tpu.memory_space<vmem>>, vector<1x32xf32>
    %5 = vector.broadcast %4 : vector<1x32xf32> to vector<64x32xf32>
    %6 = arith.addf %3, %5 : vector<64x32xf32>
    %cst_5 = arith.constant 0.000000e+00 : f32
    %7 = vector.broadcast %cst_5 : f32 to vector<64x32xf32>
    %8 = arith.maximumf %6, %7 : vector<64x32xf32>
    %c0_6 = arith.constant 0 : index
    %c0_7 = arith.constant 0 : index
    %9 = vector.load %arg4[%c0_6, %c0_7] : memref<32x128xf32, #tpu.memory_space<vmem>>, vector<32x128xf32>
    %cst_8 = arith.constant dense<0.000000e+00> : vector<64x128xf32>
    %10 = tpu.matmul %8, %9, %cst_8 {dimension_numbers = #tpu.dot_dimension_numbers<[1], [0], [0], [1], [0, 0, 1, 1], [], []>} : vector<64x32xf32>, vector<32x128xf32>, vector<64x128xf32> -> vector<64x128xf32>
    %c0_9 = arith.constant 0 : index
    %c0_10 = arith.constant 0 : index
    %11 = vector.load %arg5[%c0_9, %c0_10] : memref<1x128xf32, #tpu.memory_space<vmem>>, vector<1x128xf32>
    %12 = vector.broadcast %11 : vector<1x128xf32> to vector<64x128xf32>
    %13 = arith.addf %10, %12 : vector<64x128xf32>
    %c0_11 = arith.constant 0 : index
    %c0_12 = arith.constant 0 : index
    %14 = vector.load %arg6[%c0_11, %c0_12] : memref<64x128xf32, #tpu.memory_space<vmem>>, vector<64x128xf32>
    tpu.vector_store %arg6[%c0_11, %c0_12], %13 {strides = array<i32>} : memref<64x128xf32, #tpu.memory_space<vmem>>, vector<64x128xf32>,
    return
  }
  func.func @transform_0(%arg0: i32) -> (i32, i32) {
    %c0_i32 = arith.constant 0 : i32
    %c0_i32_0 = arith.constant 0 : i32
    return %arg0, %c0_i32 : i32, i32
  }
  func.func @transform_1(%arg0: i32) -> (i32, i32) {
    %c0_i32 = arith.constant 0 : i32
    %c0_i32_0 = arith.constant 0 : i32
    %c0_i32_1 = arith.constant 0 : i32
    return %c0_i32, %c0_i32_0 : i32, i32
  }
  func.func @transform_2(%arg0: i32) -> (i32, i32) {
    %c0_i32 = arith.constant 0 : i32
    %c0_i32_0 = arith.constant 0 : i32
    %c0_i32_1 = arith.constant 0 : i32
    return %c0_i32, %c0_i32_0 : i32, i32
  }
  func.func @transform_3(%arg0: i32) -> (i32, i32) {
    %c0_i32 = arith.constant 0 : i32
    %c0_i32_0 = arith.constant 0 : i32
    %c0_i32_1 = arith.constant 0 : i32
    return %c0_i32, %c0_i32_0 : i32, i32
  }
  func.func @transform_4(%arg0: i32) -> (i32, i32) {
    %c0_i32 = arith.constant 0 : i32
    %c0_i32_0 = arith.constant 0 : i32
    %c0_i32_1 = arith.constant 0 : i32
    return %c0_i32, %c0_i32_0 : i32, i32
  }
  func.func @transform_5(%arg0: i32) -> (i32, i32) {
    %c0_i32 = arith.constant 0 : i32
    %c0_i32_0 = arith.constant 0 : i32
    return %arg0, %c0_i32 : i32, i32
  }
}

</mosaic_0001>

<bundles_post_ra>
// kernel: mlp_forward.1
= control target key start
LH: loop header
LB: loop body
LE: loop exit
PB: predicated region body
PF: predicated region fallthrough
CT: control target
= control target key end

     0   :  { %s559_s18 = smov 0   ;;  %s623_s0 = inlined_call_operand.vmem [shape: f32[256,16], index: 0, kind: input, shape index: {}]   ;;  %s624_s1 = inlined_call_operand.vmem [shape: f32[16,32], index: 1, kind: input, shape index: {}]   ;;  %s625_s2 = inlined_call_operand.vmem [shape: f32[1,32], index: 2, kind: input, shape index: {}]   ;;  %s626_s3 = inlined_call_operand.vmem [shape: f32[32,128], index: 3, kind: input, shape index: {}]   ;;  %s627_s4 = inlined_call_operand.vmem [shape: f32[1,128], index: 4, kind: input, shape index: {}]   ;;  %s628_s5 = inlined_call_operand.vmem [shape: f32[256,128], index: 5, kind: output, shape index: {}]  }
   0x1 LB: > { %s462_s19 = sadd.s32 4294967295, %s527_s18   ;;  %p466_p0 = scmp.ge.s32.totalorder %s527_s18, 1  ;;  %s527_s18 = sphi %s559_s18, %s15_s18  }
   0x2   : > { %p188_p1 = scmp.lt.s32.totalorder %s527_s18, 5 }
   0x4   : > { %p189_p2 = pnand %p466_p0, %p188_p1 }
   0x5   : > { %s467_s24 = sshll.u32 (!%p189_p2), %s462_s19, 3 }
   0x6   : > { %192 = sbr.rel (%p189_p2) target bundleno = 343 (0x157), region = 40  ;;  %p217_p3 = scmp.lt.s32.totalorder (!%p189_p2), %s467_s24, 31 }
   0xb   : > { %v245_v0 = vld [vmem:[%s624_s1 + $0x8] sm:$0xff]  ;;  %v244_v1 = vld [vmem:[%s624_s1] sm:$0xff]  ;;  %s630_s24 = smov (!%p217_p3, %s467_s24), 31  ;;  %vm250_vm0 = vcmask 130048   ;;  %v327_v6 = vld [vmem:[%s626_s3 + $0x18] sm:$0xff]  ;;  %vm332_vm1 = vcmask 261120  }
   0xc   : > { %289 = vmatpush.msra.mxu0 %v245_v0  ;;  %489 = vmatpush.msra.mxu3 %v245_v0  ;;  %s468_s25 = sshll.u32 %s630_s24, 3  ;;  %v326_v19 = vld [vmem:[%s626_s3 + $0x10] sm:$0xff]  ;;  %v325_v20 = vld [vmem:[%s626_s3 + $0x8] sm:$0xff]  ;;  %v324_v21 = vld [vmem:[%s626_s3] sm:$0xff] }
   0xd   : > { %s220_s28 = scalar_lea.vmem %s623_s0, %s468_s25  ;;  %369 = vmatpush.msra.mxu1 %v327_v6  ;;  %491 = vmatpush.msra.mxu2 %v327_v6  ;;  %v503_v22 = vld [vmem:[%s625_s2] ss:$0 sm:$0xff]  ;;  %s226_s19 = scalar_lea.vmem %s628_s5, %s468_s25 }
   0xe   : > { %290 = vmatpush.msra.mxu0 %v244_v1  ;;  %490 = vmatpush.msra.mxu3 %v244_v1  ;;  %v228_v2 = vld [vmem:[%s220_s28] sm:$0xff]  ;;  %v233_v3 = vld [vmem:[%s220_s28 + $0x28] sm:$0xff]  ;;  %v234_v7 = vld [vmem:[%s220_s28 + $0x30] sm:$0xff] }
   0xf   : > { %505 = vtanh.f32 %v228_v2  ;;  %v229_v4 = vld [vmem:[%s220_s28 + $0x8] sm:$0xff]  ;;  %v230_v9 = vld [vmem:[%s220_s28 + $0x10] sm:$0xff]  ;;  %v235_v11 = vld [vmem:[%s220_s28 + $0x38] sm:$0xff]  ;;  %370 = vmatpush.msra.mxu1 %v326_v19  ;;  %492 = vmatpush.msra.mxu2 %v326_v19 }
  0x10   : > { %507 = vtanh.f32 %v233_v3  ;;  %v231_v13 = vld [vmem:[%s220_s28 + $0x18] sm:$0xff]  ;;  %v232_v16 = vld [vmem:[%s220_s28 + $0x20] sm:$0xff] }
  0x11   : > { %509 = vtanh.f32 %v229_v4  ;;  %371 = vmatpush.msra.mxu1 %v325_v20  ;;  %493 = vmatpush.msra.mxu2 %v325_v20  ;;  %v504_v47 = vld [vmem:[%s627_s4] ss:$0 sm:$0xff] }
  0x12   : > { %511 = vtanh.f32 %v234_v7 }
  0x13   : > { %513 = vtanh.f32 %v230_v9  ;;  %372 = vmatpush.msra.mxu1 %v324_v21  ;;  %494 = vmatpush.msra.mxu2 %v324_v21 }
  0x14   : > { %515 = vtanh.f32 %v235_v11 }
  0x15   : > { %v506_v5 = vpop.eup %505  ;;  %517 = vtanh.f32 %v231_v13 }
  0x16   : > { %471 = vmatmul.msk.f32.vlgmr.msra.gmra.mxu0 %vm250_vm0, %v506_v5  ;;  %v508_v8 = vpop.eup %507  ;;  %519 = vtanh.f32 %v232_v16 }
  0x17   : > { %v510_v10 = vpop.eup %509  ;;  %476 = vmatmul.msk.f32.vlgmr.msra.gmra.mxu3 %vm250_vm0, %v508_v8 }
  0x18   : > { %v512_v12 = vpop.eup %511 }
  0x19   : > { %v514_v14 = vpop.eup %513 }
  0x1a   : > { %v516_v15 = vpop.eup %515 }
  0x1b   : > { %v518_v17 = vpop.eup %517 }
  0x1c   : > { %v520_v18 = vpop.eup %519 }
  0x1e   : > { %472 = vmatmul.msk.f32.gmra.mxu0 %vm250_vm0, %v510_v10 }
  0x1f   : > { %477 = vmatmul.msk.f32.gmra.mxu3 %vm250_vm0, %v512_v12 }
  0x26   : > { %473 = vmatmul.msk.f32.gmra.mxu0 %vm250_vm0, %v514_v14 }
  0x27   : > { %478 = vmatmul.msk.f32.gmra.mxu3 %vm250_vm0, %v516_v15 }
  0x2e   : > { %474 = vmatmul.msk.f32.gmra.mxu0 %vm250_vm0, %v518_v17 }
  0x36   : > { %475 = vmatmul.msk.f32.gmra.mxu0 %vm250_vm0, %v520_v18 }
  0x93   : > { %v292_v23 = vpop.f32.mrf.mxu0 }
  0x94   : > { %v293_v24 = vadd.f32 %v503_v22, %v292_v23 }
  0x96   : > { %v316_v25 = vmax.f32 %v293_v24, 0.0 }
  0x98   : > { %479 = vmatmul.msk.f32.vlgmr.msra.gmra.mxu1 %vm332_vm1, %v316_v25 }
  0x9a   : > { %v307_v35 = vpop.f32.mrf.mxu3 }
  0x9b   : > { %v295_v26 = vpop.f32.mrf.mxu0  ;;  %v308_v39 = vadd.f32 %v503_v22, %v307_v35 }
  0x9c   : > { %v296_v27 = vadd.f32 %v503_v22, %v295_v26 }
  0x9d   : > { %v321_v41 = vmax.f32 %v308_v39, 0.0 }
  0x9e   : > { %v317_v28 = vmax.f32 %v296_v27, 0.0 }
  0xa0   : > { %480 = vmatmul.msk.f32.gmra.mxu1 %vm332_vm1, %v317_v28 }
  0xa2   : > { %v310_v40 = vpop.f32.mrf.mxu3 }
  0xa3   : > { %v298_v29 = vpop.f32.mrf.mxu0  ;;  %v311_v42 = vadd.f32 %v503_v22, %v310_v40 }
  0xa4   : > { %v299_v30 = vadd.f32 %v503_v22, %v298_v29 }
  0xa5   : > { %v322_v43 = vmax.f32 %v311_v42, 0.0 }
  0xa6   : > { %v318_v31 = vmax.f32 %v299_v30, 0.0 }
  0xa8   : > { %481 = vmatmul.msk.f32.gmra.mxu1 %vm332_vm1, %v318_v31 }
  0xaa   : > { %v313_v44 = vpop.f32.mrf.mxu3 }
  0xab   : > { %v301_v32 = vpop.f32.mrf.mxu0  ;;  %v314_v45 = vadd.f32 %v503_v22, %v313_v44 }
  0xac   : > { %v302_v33 = vadd.f32 %v503_v22, %v301_v32 }
  0xad   : > { %v323_v46 = vmax.f32 %v314_v45, 0.0 }
  0xae   : > { %v319_v34 = vmax.f32 %v302_v33, 0.0 }
  0xb0   : > { %482 = vmatmul.msk.f32.gmra.mxu1 %vm332_vm1, %v319_v34 }
  0xb3   : > { %v304_v36 = vpop.f32.mrf.mxu0 }
  0xb4   : > { %v305_v37 = vadd.f32 %v503_v22, %v304_v36 }
  0xb6   : > { %v320_v38 = vmax.f32 %v305_v37, 0.0 }
  0xb8   : > { %483 = vmatmul.msk.f32.vlgmr.msra.gmra.mxu2 %vm332_vm1, %v320_v38 }
  0xc0   : > { %484 = vmatmul.msk.f32.gmra.mxu2 %vm332_vm1, %v321_v41 }
  0xc8   : > { %485 = vmatmul.msk.f32.gmra.mxu2 %vm332_vm1, %v322_v43 }
  0xd0   : > { %486 = vmatmul.msk.f32.gmra.mxu2 %vm332_vm1, %v323_v46 }
 0x115   : > { %v374_v48 = vpop.f32.mrf.mxu1 }
 0x116   : > { %v375_v49 = vadd.f32 %v504_v47, %v374_v48 }
 0x118   : > { %398 = vst [vmem:[%s226_s19] sm:$0xff] %v375_v49 }
 0x11d   : > { %v377_v50 = vpop.f32.mrf.mxu1 }
 0x11e   : > { %v378_v51 = vadd.f32 %v504_v47, %v377_v50 }
 0x120   : > { %399 = vst [vmem:[%s226_s19 + $0x8] sm:$0xff] %v378_v51 }
 0x125   : > { %v380_v52 = vpop.f32.mrf.mxu1 }
 0x126   : > { %v381_v53 = vadd.f32 %v504_v47, %v380_v52 }
 0x128   : > { %400 = vst [vmem:[%s226_s19 + $0x10] sm:$0xff] %v381_v53 }
 0x12d   : > { %v383_v54 = vpop.f32.mrf.mxu1 }
 0x12e   : > { %v384_v55 = vadd.f32 %v504_v47, %v383_v54 }
 0x130   : > { %401 = vst [vmem:[%s226_s19 + $0x18] sm:$0xff] %v384_v55 }
 0x13b   : > { %v386_v56 = vpop.f32.mrf.mxu2 }
 0x13c   : > { %v387_v57 = vadd.f32 %v504_v47, %v386_v56 }
 0x13e   : > { %402 = vst [vmem:[%s226_s19 + $0x20] sm:$0xff] %v387_v57 }
 0x143   : > { %v389_v58 = vpop.f32.mrf.mxu2 }
 0x144   : > { %v390_v59 = vadd.f32 %v504_v47, %v389_v58 }
 0x146   : > { %403 = vst [vmem:[%s226_s19 + $0x28] sm:$0xff] %v390_v59 }
 0x14b   : > { %v392_v60 = vpop.f32.mrf.mxu2 }
 0x14c   : > { %v393_v61 = vadd.f32 %v504_v47, %v392_v60 }
 0x14e   : > { %404 = vst [vmem:[%s226_s19 + $0x30] sm:$0xff] %v393_v61 }
 0x153   : > { %v395_v62 = vpop.f32.mrf.mxu2 }
 0x154   : > { %v396_v63 = vadd.f32 %v504_v47, %v395_v62 }
 0x156   : > { %405 = vst [vmem:[%s226_s19 + $0x38] sm:$0xff] %v396_v63 }
 0x157 PF: > { %s15_s18 = sadd.s32 1, %s527_s18  }
 0x158   : > { %p12_p4 = scmp.ge.s32.totalorder %s15_s18, 6  }
 0x15a   :  { %14 = sbr.rel (!%p12_p4) target bundleno = 1 (0x1), region = 70 }

</bundles_post_ra>
